<compile_context>
chip_gen: v6e
topology: v6e:2x2x1
jax: 0.10.0
libtpu: 0.0.40
codegen_flags: <defaults>
</compile_context>

<pallas_src>
import jax
import jax.numpy as jnp
from jax.experimental import pallas as pl
from jax.experimental.pallas import tpu as pltpu


def _round_up(x, m):
    return (x + m - 1) // m * m


def value_net_kernel(x_ref, w1_ref, b1_ref, w2_ref, b2_ref, w3_ref, b3_ref,
                     o_ref):
    x = x_ref[...]                                              # (TB, K) f32

    h1 = jnp.dot(x, w1_ref[...], preferred_element_type=jnp.float32)
    h1 = jnp.maximum(h1 + b1_ref[...], 0.0)                     # (TB, H)

    h2 = jnp.dot(h1, w2_ref[...], preferred_element_type=jnp.float32)
    h2 = jnp.maximum(h2 + b2_ref[...], 0.0)                     # (TB, H)

    # Head: w3 is (H, 1).  Transpose h2 (XLU) and reduce over sublanes
    # (VPU + XLU) instead of pushing a width-1 matmul through the MXU; this
    # also yields a lane-dense (1, TB) row for an unmasked store.
    h2_t = h2.T                                                 # (H, TB)
    out_row = jnp.sum(h2_t * w3_ref[...], axis=0, keepdims=True)  # (1, TB)
    o_ref[...] = (out_row + b3_ref[...]).astype(o_ref.dtype)


def value_network_forward(state, params):
    """state: (B, state_dim) f32. params: (in,out) weights + (1,out) biases."""
    B, K = state.shape
    w1, b1 = params["w1"], params["b1"]
    w2, b2 = params["w2"], params["b2"]
    w3, b3 = params["w3"], params["b3"]
    H = w1.shape[1]

    # Batch tile: <=128 rows (keeps f32 activations within the vreg budget),
    # multiple of 8 sublanes.  Pad the batch up to a tile multiple.
    TB = min(128, _round_up(max(B, 1), 8))
    B_pad = _round_up(B, TB)
    num_tiles = B_pad // TB
    if B_pad != B:
        state = jnp.pad(state, ((0, B_pad - B), (0, 0)))

    # TODO(synk): if the producer of `state` can emit a 128-lane-padded
    # feature dim, pad w1 once at init so the first matmul uses full MXU K
    # width without adding a per-call pad copy here.

    const = lambda i: (0, 0)  # weights/biases stay resident across the grid

    out = pl.pallas_call(
        value_net_kernel,
        out_shape=jax.ShapeDtypeStruct((1, B_pad), jnp.float32),
        grid=(num_tiles,),
        in_specs=[
            pl.BlockSpec((TB, K), lambda i: (i, 0)),  # state: pipelined tiles
            pl.BlockSpec((K, H), const),              # w1
            pl.BlockSpec((1, H), const),              # b1
            pl.BlockSpec((H, H), const),              # w2
            pl.BlockSpec((1, H), const),              # b2
            pl.BlockSpec((H, 1), const),              # w3
            pl.BlockSpec((1, 1), const),              # b3
        ],
        out_specs=pl.BlockSpec((1, TB), lambda i: (0, i)),  # lane-dense rows
        compiler_params=pltpu.CompilerParams(
            dimension_semantics=("parallel",)),
    )(state, w1, b1, w2, b2, w3, b3)

    return out[0, :B].reshape(B, 1)


def init_value_network_params(key, state_dim, hidden_dim, init_w=0.003):
    """Deterministic init mirroring nn.Linear defaults + uniform init_w head."""
    k1, k2, k3, k4, k5, k6 = jax.random.split(key, 6)

    def linear_init(kw, kb, fan_in, fan_out):
        bound = 1.0 / jnp.sqrt(fan_in)
        w = jax.random.uniform(kw, (fan_in, fan_out), jnp.float32, -bound, bound)
        b = jax.random.uniform(kb, (1, fan_out), jnp.float32, -bound, bound)
        return w, b

    w1, b1 = linear_init(k1, k2, state_dim, hidden_dim)
    w2, b2 = linear_init(k3, k4, hidden_dim, hidden_dim)
    # linear3: uniform_(-init_w, init_w) on both weight and bias
    w3 = jax.random.uniform(k5, (hidden_dim, 1), jnp.float32, -init_w, init_w)
    b3 = jax.random.uniform(k6, (1, 1), jnp.float32, -init_w, init_w)
    return {"w1": w1, "b1": b1, "w2": w2, "b2": b2, "w3": w3, "b3": b3}


def value_network_ref(state, p):
    h1 = jnp.maximum(state @ p["w1"] + p["b1"], 0.0)
    h2 = jnp.maximum(h1 @ p["w2"] + p["b2"], 0.0)
    return h2 @ p["w3"] + p["b3"]


if __name__ == "__main__":
    key = jax.random.PRNGKey(0)
    state_dim = 32    # stand-in for env.observation_space.shape[0]
    hidden_dim = 128  # matches the module

    k_params, k_s1, k_s2 = jax.random.split(key, 3)
    params = init_value_network_params(k_params, state_dim, hidden_dim)

    # Small shape (single tile path).
    state_small = jax.random.normal(k_s1, (8, state_dim), jnp.float32)
    out_small = jax.block_until_ready(value_network_forward(state_small, params))
    ref_small = value_network_ref(state_small, params)
    assert out_small.shape == (8, 1), out_small.shape
    assert jnp.allclose(out_small, ref_small, atol=1e-5, rtol=1e-5), \
        "mismatch vs JAX reference (small batch)"

    # Ragged larger batch: exercises the gridded/pipelined path + tail padding.
    state_big = jax.random.normal(k_s2, (300, state_dim), jnp.float32)
    out_big = jax.block_until_ready(value_network_forward(state_big, params))
    ref_big = value_network_ref(state_big, params)
    assert out_big.shape == (300, 1), out_big.shape
    assert jnp.allclose(out_big, ref_big, atol=1e-5, rtol=1e-5), \
        "mismatch vs JAX reference (gridded batch)"

    print("KERNEL_OK")
</pallas_src>

<mosaic_0001>
module attributes {stable_mosaic.version = 11 : i64} {
  func.func @value_net_kernel(%arg0: i32, %arg1: memref<8x32xf32, #tpu.memory_space<vmem>>, %arg2: memref<32x128xf32, #tpu.memory_space<vmem>>, %arg3: memref<1x128xf32, #tpu.memory_space<vmem>>, %arg4: memref<128x128xf32, #tpu.memory_space<vmem>>, %arg5: memref<1x128xf32, #tpu.memory_space<vmem>>, %arg6: memref<128x1xf32, #tpu.memory_space<vmem>>, %arg7: memref<1x1xf32, #tpu.memory_space<vmem>>, %arg8: memref<1x8xf32, #tpu.memory_space<vmem>>) attributes {dimension_semantics = [#tpu.dimension_semantics<parallel>], iteration_bounds = array<i64: 1>, scalar_prefetch = 0 : i64, scratch_operands = 0 : i64, tpu.core_type = #tpu.core_type<tc>, window_params = [{transform_indices = @transform_0, window_bounds = array<i64: 8, 32>}, {pipeline_mode = #tpu.pipeline_mode<synchronous>, transform_indices = @transform_1, window_bounds = array<i64: 32, 128>}, {pipeline_mode = #tpu.pipeline_mode<synchronous>, transform_indices = @transform_2, window_bounds = array<i64: 1, 128>}, {pipeline_mode = #tpu.pipeline_mode<synchronous>, transform_indices = @transform_3, window_bounds = array<i64: 128, 128>}, {pipeline_mode = #tpu.pipeline_mode<synchronous>, transform_indices = @transform_4, window_bounds = array<i64: 1, 128>}, {pipeline_mode = #tpu.pipeline_mode<synchronous>, transform_indices = @transform_5, window_bounds = array<i64: 128, 1>}, {pipeline_mode = #tpu.pipeline_mode<synchronous>, transform_indices = @transform_6, window_bounds = array<i64: 1, 1>}, {transform_indices = @transform_7, window_bounds = array<i64: 1, 8>}]} {
    %c0 = arith.constant 0 : index
    %c0_0 = arith.constant 0 : index
    %0 = vector.load %arg1[%c0, %c0_0] : memref<8x32xf32, #tpu.memory_space<vmem>>, vector<8x32xf32>
    %c0_1 = arith.constant 0 : index
    %c0_2 = arith.constant 0 : index
    %1 = vector.load %arg2[%c0_1, %c0_2] : memref<32x128xf32, #tpu.memory_space<vmem>>, vector<32x128xf32>
    %cst = arith.constant dense<0.000000e+00> : vector<8x128xf32>
    %2 = tpu.matmul %0, %1, %cst {dimension_numbers = #tpu.dot_dimension_numbers<[1], [0], [0], [1], [0, 0, 1, 1], [], []>} : vector<8x32xf32>, vector<32x128xf32>, vector<8x128xf32> -> vector<8x128xf32>
    %c0_3 = arith.constant 0 : index
    %c0_4 = arith.constant 0 : index
    %3 = vector.load %arg3[%c0_3, %c0_4] : memref<1x128xf32, #tpu.memory_space<vmem>>, vector<1x128xf32>
    %4 = vector.broadcast %3 : vector<1x128xf32> to vector<8x128xf32>
    %5 = arith.addf %2, %4 : vector<8x128xf32>
    %cst_5 = arith.constant 0.000000e+00 : f32
    %6 = vector.broadcast %cst_5 : f32 to vector<8x128xf32>
    %7 = arith.maximumf %5, %6 : vector<8x128xf32>
    %c0_6 = arith.constant 0 : index
    %c0_7 = arith.constant 0 : index
    %8 = vector.load %arg4[%c0_6, %c0_7] : memref<128x128xf32, #tpu.memory_space<vmem>>, vector<128x128xf32>
    %cst_8 = arith.constant dense<0.000000e+00> : vector<8x128xf32>
    %9 = tpu.matmul %7, %8, %cst_8 {dimension_numbers = #tpu.dot_dimension_numbers<[1], [0], [0], [1], [0, 0, 1, 1], [], []>} : vector<8x128xf32>, vector<128x128xf32>, vector<8x128xf32> -> vector<8x128xf32>
    %c0_9 = arith.constant 0 : index
    %c0_10 = arith.constant 0 : index
    %10 = vector.load %arg5[%c0_9, %c0_10] : memref<1x128xf32, #tpu.memory_space<vmem>>, vector<1x128xf32>
    %11 = vector.broadcast %10 : vector<1x128xf32> to vector<8x128xf32>
    %12 = arith.addf %9, %11 : vector<8x128xf32>
    %cst_11 = arith.constant 0.000000e+00 : f32
    %13 = vector.broadcast %cst_11 : f32 to vector<8x128xf32>
    %14 = arith.maximumf %12, %13 : vector<8x128xf32>
    %15 = tpu.transpose %14, [1, 0] : vector<8x128xf32> -> vector<128x8xf32>
    %c0_12 = arith.constant 0 : index
    %c0_13 = arith.constant 0 : index
    %16 = vector.load %arg6[%c0_12, %c0_13] : memref<128x1xf32, #tpu.memory_space<vmem>>, vector<128x1xf32>
    %17 = vector.broadcast %16 : vector<128x1xf32> to vector<128x8xf32>
    %18 = arith.mulf %15, %17 : vector<128x8xf32>
    %cst_14 = arith.constant dense<0.000000e+00> : vector<8xf32>
    %19 = vector.multi_reduction <add>, %18, %cst_14 [0] : vector<128x8xf32> to vector<8xf32>
    %20 = vector.shape_cast %19 : vector<8xf32> to vector<1x8xf32>
    %c0_15 = arith.constant 0 : index
    %c0_16 = arith.constant 0 : index
    %21 = vector.load %arg7[%c0_15, %c0_16] : memref<1x1xf32, #tpu.memory_space<vmem>>, vector<1x1xf32>
    %22 = vector.broadcast %21 : vector<1x1xf32> to vector<1x8xf32>
    %23 = arith.addf %20, %22 : vector<1x8xf32>
    %c0_17 = arith.constant 0 : index
    %c0_18 = arith.constant 0 : index
    %24 = vector.load %arg8[%c0_17, %c0_18] : memref<1x8xf32, #tpu.memory_space<vmem>>, vector<1x8xf32>
    tpu.vector_store %arg8[%c0_17, %c0_18], %23 {strides = array<i32>} : memref<1x8xf32, #tpu.memory_space<vmem>>, vector<1x8xf32>,
    return
  }
  func.func @transform_0(%arg0: i32) -> (i32, i32) {
    %c0_i32 = arith.constant 0 : i32
    %c0_i32_0 = arith.constant 0 : i32
    return %arg0, %c0_i32 : i32, i32
  }
  func.func @transform_1(%arg0: i32) -> (i32, i32) {
    %c0_i32 = arith.constant 0 : i32
    %c0_i32_0 = arith.constant 0 : i32
    %c0_i32_1 = arith.constant 0 : i32
    return %c0_i32, %c0_i32_0 : i32, i32
  }
  func.func @transform_2(%arg0: i32) -> (i32, i32) {
    %c0_i32 = arith.constant 0 : i32
    %c0_i32_0 = arith.constant 0 : i32
    %c0_i32_1 = arith.constant 0 : i32
    return %c0_i32, %c0_i32_0 : i32, i32
  }
  func.func @transform_3(%arg0: i32) -> (i32, i32) {
    %c0_i32 = arith.constant 0 : i32
    %c0_i32_0 = arith.constant 0 : i32
    %c0_i32_1 = arith.constant 0 : i32
    return %c0_i32, %c0_i32_0 : i32, i32
  }
  func.func @transform_4(%arg0: i32) -> (i32, i32) {
    %c0_i32 = arith.constant 0 : i32
    %c0_i32_0 = arith.constant 0 : i32
    %c0_i32_1 = arith.constant 0 : i32
    return %c0_i32, %c0_i32_0 : i32, i32
  }
  func.func @transform_5(%arg0: i32) -> (i32, i32) {
    %c0_i32 = arith.constant 0 : i32
    %c0_i32_0 = arith.constant 0 : i32
    %c0_i32_1 = arith.constant 0 : i32
    return %c0_i32, %c0_i32_0 : i32, i32
  }
  func.func @transform_6(%arg0: i32) -> (i32, i32) {
    %c0_i32 = arith.constant 0 : i32
    %c0_i32_0 = arith.constant 0 : i32
    %c0_i32_1 = arith.constant 0 : i32
    return %c0_i32, %c0_i32_0 : i32, i32
  }
  func.func @transform_7(%arg0: i32) -> (i32, i32) {
    %c0_i32 = arith.constant 0 : i32
    %c0_i32_0 = arith.constant 0 : i32
    return %c0_i32, %arg0 : i32, i32
  }
}

</mosaic_0001>

<bundles_post_ra>
// kernel: tpu_custom_call.1
= control target key start
LH: loop header
LB: loop body
LE: loop exit
PB: predicated region body
PF: predicated region fallthrough
CT: control target
= control target key end

     0   :  { %s794_s0 = inlined_call_operand.vmem [shape: f32[8,32], index: 0, kind: input, shape index: {}]   ;;  %s795_s1 = inlined_call_operand.hbm [shape: f32[32,128], index: 1, kind: input, shape index: {}]   ;;  %s796_s2 = inlined_call_operand.hbm [shape: f32[1,128], index: 2, kind: input, shape index: {}]   ;;  %s797_s3 = inlined_call_operand.vmem [shape: f32[128,128], index: 3, kind: input, shape index: {}]   ;;  %s798_s4 = inlined_call_operand.vmem [shape: f32[1,128], index: 4, kind: input, shape index: {}]   ;;  %s799_s5 = inlined_call_operand.vmem [shape: f32[128,1], index: 5, kind: input, shape index: {}]   ;;  %s800_s6 = inlined_call_operand.<no memory space> [shape: f32[1,1], index: 6, kind: input, shape index: {}]   ;;  %s801_s7 = inlined_call_operand.hbm [shape: f32[1,8], index: 7, kind: output, shape index: {}]  }
   0x1   :  { %v12_v0 = vstv %s800_s6 }
   0x2   :  { %13 = vst [vmem:[#allocation2] sm:$0x1] %v12_v0 }
   0x3   :  { %14 = vsyncpa [#allocation4], 0 }
   0x4   :  { %15 = vsyncpa [#allocation7], 0 }
   0x5   :  { %16 = vsyncpa [#allocation5], 0  ;;  %s594_s26 = smov [#allocation3]  }
   0x6   :  { %s24_s27 = sshll.u32 %s594_s26, 4  ;;  %s25_s27 = int_to_ptr.vmem [resolvable:$true] %s24_s27 }
   0x7   :  { %s536_s28 = scalar_lea.vmem %s25_s27, 512  ;;  %p541_p1 = scmp.lt.s32.totalorder %s25_s27, %s25_s27 }
   0x8   :  { %p537_p0 = scmp.ne.s32.totalorder %s25_s27, %s536_s28  ;;  %p542_p2 = scmp.lt.s32.totalorder %s536_s28, %s536_s28 }
   0xa   :  { %p543_p3 = por %p542_p2, %p541_p1 }
   0xc   :  { %p544_p4 = pnand %p543_p3, %p537_p0 }
   0xe   :  { %547 = shalt.err (!%p544_p4)
}
   0xf   :  { %s595_s29 = smov 128   ;;  %s596_s30 = smov 8  }
  0x10   :  { %30 = dma.hbm_to_vmem [thread:$0]  %s795_s1, 512, %s25_s27, [#allocation4], %s595_s29, %s595_s29, %s596_s30  }
  0x11   :  { %s597_s6 = smov [#allocation6]  }
  0x12   :  { %s37_s10 = sshll.u32 %s597_s6, 4  ;;  %s38_s10 = int_to_ptr.vmem [resolvable:$true] %s37_s10 }
  0x13   :  { %s556_s11 = scalar_lea.vmem %s38_s10, 16  ;;  %s560_s12 = scalar_lea.vmem %s38_s10, 32 }
  0x14   :  { %p557_p5 = scmp.ne.s32.totalorder %s38_s10, %s556_s11  ;;  %p561_p6 = scmp.lt.s32.totalorder %s38_s10, %s38_s10 }
  0x15   :  { %p562_p7 = scmp.lt.s32.totalorder %s560_s12, %s556_s11 }
  0x17   :  { %p563_p8 = por %p562_p7, %p561_p6 }
  0x19   :  { %p564_p9 = pnand %p563_p8, %p557_p5 }
  0x1b   :  { %567 = shalt.err (!%p564_p9)
}
  0x1c   :  { %40 = dma.hbm_to_vmem [thread:$0]  %s796_s2, 16, %s38_s10, [#allocation7]  }
  0x1d   :  { %588 = dma.done.wait [#allocation4], 512  }
  0x1e   :  { %589 = vsyncadd [#allocation4], 4294966784 }
  0x1f   :  { %590 = dma.done.wait [#allocation7], 16  }
  0x20   :  { %591 = vsyncadd [#allocation7], 4294967280  ;;  %v598_v1 = vmov 0.0   ;;  %vm599_vm0 = vmmov 0   ;;  %v59_v2 = vld [vmem:[#allocation3 + $0x18] sm:$0xff]  ;;  %v58_v3 = vld [vmem:[#allocation3 + $0x10] sm:$0xff] }
  0x21   :  { %472 = vmatprep.subr.mxu0 %v598_v1  ;;  %480 = vmatprep.mubr.msk.f32.mxu0 %vm599_vm0, %v598_v1  ;;  %v157_v4 = vld [vmem:[%s797_s3 + $0x78] sm:$0xff]  ;;  %v57_v5 = vld [vmem:[#allocation3 + $0x8] sm:$0xff]  ;;  %v56_v8 = vld [vmem:[#allocation3] sm:$0xff]  ;;  %vm67_vm1 = vcmask 261120   ;;  %v600_v29 = vmov 0   ;;  %vm380_vm2 = vcmask 64512  }
  0x22   :  { %483 = vmatprep.subr.mxu1 %v598_v1  ;;  %515 = vmatprep.mubr.msk.f32.mxu1 %vm599_vm0, %v598_v1  ;;  %v156_v6 = vld [vmem:[%s797_s3 + $0x70] sm:$0xff]  ;;  %v155_v7 = vld [vmem:[%s797_s3 + $0x68] sm:$0xff]  ;;  %v55_v9 = vld [vmem:[%s794_s0] sm:$0xff]  ;;  %vm429_vm3 = vcmask 57344  }
  0x23   :  { %473 = vmatpush3.msra.mxu0 %v59_v2  ;;  %484 = vmatpush3.msra.mxu1 %v157_v4  ;;  %v154_v10 = vld [vmem:[%s797_s3 + $0x60] sm:$0xff]  ;;  %v153_v11 = vld [vmem:[%s797_s3 + $0x58] sm:$0xff]  ;;  %v152_v12 = vld [vmem:[%s797_s3 + $0x50] sm:$0xff] }
  0x24   :  { %474 = vmatprep.subr.mxu0 %v598_v1  ;;  %485 = vmatprep.subr.mxu1 %v598_v1  ;;  %v151_v13 = vld [vmem:[%s797_s3 + $0x48] sm:$0xff]  ;;  %v150_v14 = vld [vmem:[%s797_s3 + $0x40] sm:$0xff]  ;;  %v149_v15 = vld [vmem:[%s797_s3 + $0x38] sm:$0xff] }
  0x25   :  { %475 = vmatpush3.msra.mxu0 %v58_v3  ;;  %486 = vmatpush3.msra.mxu1 %v156_v6  ;;  %v148_v16 = vld [vmem:[%s797_s3 + $0x30] sm:$0xff]  ;;  %v147_v17 = vld [vmem:[%s797_s3 + $0x28] sm:$0xff]  ;;  %v146_v18 = vld [vmem:[%s797_s3 + $0x20] sm:$0xff] }
  0x26   :  { %476 = vmatprep.subr.mxu0 %v598_v1  ;;  %487 = vmatprep.subr.mxu1 %v598_v1  ;;  %v145_v19 = vld [vmem:[%s797_s3 + $0x18] sm:$0xff]  ;;  %v144_v20 = vld [vmem:[%s797_s3 + $0x10] sm:$0xff]  ;;  %v143_v21 = vld [vmem:[%s797_s3 + $0x8] sm:$0xff] }
  0x27   :  { %477 = vmatpush3.msra.mxu0 %v57_v5  ;;  %488 = vmatpush3.msra.mxu1 %v155_v7  ;;  %v142_v22 = vld [vmem:[%s797_s3] sm:$0xff]  ;;  %v269_v28 = vld [vmem:[%s799_s5 + $0x8] sm:$0xff]  ;;  %v270_v30 = vld [vmem:[%s799_s5 + $0x10] sm:$0xff] }
  0x28   :  { %478 = vmatprep.subr.mxu0 %v598_v1  ;;  %489 = vmatprep.subr.mxu1 %v598_v1  ;;  %v447_v23 = vld [vmem:[#allocation6] ss:$0 sm:$0xff]  ;;  %v271_v31 = vld [vmem:[%s799_s5 + $0x18] sm:$0xff]  ;;  %v273_v33 = vld [vmem:[%s799_s5 + $0x28] sm:$0xff] }
  0x29   :  { %479 = vmatpush3.msra.mxu0 %v56_v8  ;;  %490 = vmatpush3.msra.mxu1 %v154_v10  ;;  %v272_v32 = vld [vmem:[%s799_s5 + $0x20] sm:$0xff]  ;;  %v274_v34 = vld [vmem:[%s799_s5 + $0x30] sm:$0xff]  ;;  %v275_v35 = vld [vmem:[%s799_s5 + $0x38] sm:$0xff] }
  0x2a   :  { %481 = vmatmul.mubr.msk.f32.vlgmr.msra.gmra.mxu0 %vm67_vm1, %v55_v9  ;;  %491 = vmatprep.subr.mxu1 %v598_v1  ;;  %v276_v36 = vld [vmem:[%s799_s5 + $0x40] sm:$0xff]  ;;  %v277_v37 = vld [vmem:[%s799_s5 + $0x48] sm:$0xff]  ;;  %v278_v38 = vld [vmem:[%s799_s5 + $0x50] sm:$0xff] }
  0x2b   :  { %492 = vmatpush3.msra.mxu1 %v153_v11  ;;  %527 = vset.pattern.permute.xlu1 %v600_v29  ;;  %v279_v39 = vld [vmem:[%s799_s5 + $0x58] sm:$0xff]  ;;  %v280_v40 = vld [vmem:[%s799_s5 + $0x60] sm:$0xff]  ;;  %v281_v41 = vld [vmem:[%s799_s5 + $0x68] sm:$0xff] }
  0x2c   :  { %493 = vmatprep.subr.mxu1 %v598_v1  ;;  %291 = vperm.xlu1 %527, %v269_v28   ;;  %v282_v42 = vld [vmem:[%s799_s5 + $0x70] sm:$0xff]  ;;  %v283_v43 = vld [vmem:[%s799_s5 + $0x78] sm:$0xff]  ;;  %v418_v44 = vld [vmem:[#allocation2] sm:$0x1] }
  0x2d   :  { %494 = vmatpush3.msra.mxu1 %v152_v12  ;;  %v449_v45 = vld [vmem:[%s798_s4] ss:$0 sm:$0xff]  ;;  %s601_s4 = smov [#allocation8]  }
  0x2e   :  { %495 = vmatprep.subr.mxu1 %v598_v1  ;;  %v268_v50 = vld [vmem:[%s799_s5] sm:$0xff]  ;;  %s437_s5 = sshll.u32 %s601_s4, 4  ;;  %s438_s5 = int_to_ptr.vmem [resolvable:$true] %s437_s5 }
  0x2f   :  { %496 = vmatpush3.msra.mxu1 %v151_v13  ;;  %s568_s0 = scalar_lea.vmem %s438_s5, 16  ;;  %s572_s25 = scalar_lea.vmem %s438_s5, 32 }
  0x30   :  { %497 = vmatprep.subr.mxu1 %v598_v1  ;;  %296 = vperm.xlu1 %527, %v270_v30   ;;  %p569_p10 = scmp.ne.s32.totalorder %s438_s5, %s568_s0  ;;  %p573_p11 = scmp.lt.s32.totalorder %s438_s5, %s438_s5 }
  0x31   :  { %498 = vmatpush3.msra.mxu1 %v150_v14  ;;  %p574_p12 = scmp.lt.s32.totalorder %s572_s25, %s568_s0 }
  0x32   :  { %499 = vmatprep.subr.mxu1 %v598_v1 }
  0x33   :  { %500 = vmatpush3.msra.mxu1 %v149_v15  ;;  %p575_p13 = por %p574_p12, %p573_p11 }
  0x34   :  { %501 = vmatprep.subr.mxu1 %v598_v1  ;;  %301 = vperm.xlu1 %527, %v271_v31  }
  0x35   :  { %502 = vmatpush3.msra.mxu1 %v148_v16  ;;  %p576_p0 = pnand %p575_p13, %p569_p10 }
  0x36   :  { %503 = vmatprep.subr.mxu1 %v598_v1 }
  0x37   :  { %504 = vmatpush3.msra.mxu1 %v147_v17 }
  0x38   :  { %505 = vmatprep.subr.mxu1 %v598_v1  ;;  %306 = vperm.xlu1 %527, %v272_v32  }
  0x39   :  { %506 = vmatpush3.msra.mxu1 %v146_v18 }
  0x3a   :  { %507 = vmatprep.subr.mxu1 %v598_v1 }
  0x3b   :  { %508 = vmatpush3.msra.mxu1 %v145_v19 }
  0x3c   :  { %509 = vmatprep.subr.mxu1 %v598_v1  ;;  %311 = vperm.xlu1 %527, %v273_v33  }
  0x3d   :  { %510 = vmatpush3.msra.mxu1 %v144_v20 }
  0x3e   :  { %511 = vmatprep.subr.mxu1 %v598_v1 }
  0x3f   :  { %512 = vmatpush3.msra.mxu1 %v143_v21 }
  0x40   :  { %513 = vmatprep.subr.mxu1 %v598_v1  ;;  %316 = vperm.xlu1 %527, %v274_v34  }
  0x41   :  { %514 = vmatpush3.msra.mxu1 %v142_v22 }
  0x44   :  { %321 = vperm.xlu1 %527, %v275_v35  }
  0x48   :  { %326 = vperm.xlu1 %527, %v276_v36  }
  0x4c   :  { %331 = vperm.xlu1 %527, %v277_v37  }
  0x50   :  { %336 = vperm.xlu1 %527, %v278_v38  }
  0x54   :  { %341 = vperm.xlu1 %527, %v279_v39  }
  0x58   :  { %346 = vperm.xlu1 %527, %v280_v40  }
  0x5c   :  { %351 = vperm.xlu1 %527, %v281_v41  }
  0x60   :  { %356 = vperm.xlu1 %527, %v282_v42  }
  0x64   :  { %361 = vperm.xlu1 %527, %v283_v43  }
  0x68   :  { %421 = vperm.xlu1 %527, %v418_v44  }
  0xa7   :  { %v292_v57 = vpop.permute.xlu1 %291 }
  0xab   :  { %v297_v59 = vpop.permute.xlu1 %296 }
  0xaf   :  { %v302_v61 = vpop.permute.xlu1 %301 }
  0xb3   :  { %v307_v63 = vpop.permute.xlu1 %306 }
  0xb7   :  { %v312_v1 = vpop.permute.xlu1 %311 }
  0xbb   :  { %v317_v3 = vpop.permute.xlu1 %316 }
  0xbf   :  { %v322_v5 = vpop.permute.xlu1 %321 }
  0xc3   :  { %v327_v7 = vpop.permute.xlu1 %326 }
  0xc7   :  { %v332_v9 = vpop.permute.xlu1 %331 }
  0xcb   :  { %v337_v11 = vpop.permute.xlu1 %336 }
  0xcf   :  { %v342_v17 = vpop.permute.xlu1 %341 }
  0xea   :  { %v137_v24 = vpop.f32.mrf.mxu0 }
  0xeb   :  { %v138_v25 = vadd.f32 %v447_v23, %v137_v24 }
  0xec   :  { %v482_v26 = vpop.f32.mrf.mxu0 }
  0xed   :  { %v141_v27 = vmax.f32 %v138_v25, 0.0 }
  0xef   :  { %516 = vmatmul.mubr.f32.vlgmr.msra.gmra.mxu1 %v141_v27  ;;  %v347_v27 = vpop.permute.xlu1 %346 }
  0xf3   :  { %v352_v37 = vpop.permute.xlu1 %351 }
 0x1af   :  { %v231_v46 = vpop.f32.mrf.mxu1 }
 0x1b0   :  { %v232_v47 = vadd.f32 %v449_v45, %v231_v46 }
 0x1b1   :  { %v517_v48 = vpop.f32.mrf.mxu1 }
 0x1b2   :  { %v235_v49 = vmax.f32 %v232_v47, 0.0  ;;  %v357_v47 = vpop.permute.xlu1 %356 }
 0x1b4   :  { %236 = vxpose.xlu0.b32.start.end [1/1] (short) %v235_v49, 128 }
 0x1dd   :  { %526 = vset.pattern.permute.xlu0 %v600_v29 }
 0x219   :  { %286 = vperm.xlu0 %526, %v268_v50  }
 0x230   :  { %v252_v51 = vpop.trf.xlu0 }
 0x234   :  { %v253_v52 = vpop.trf.xlu0 }
 0x235   :  { %v365_v13 = vmul.f32 %v292_v57, %v253_v52  ;;  %v362_v57 = vpop.permute.xlu1 %361 }
 0x237   :  { %v382_v18 = vsel %vm380_vm2, %v365_v13, 0.0 }
 0x238   :  { %v254_v53 = vpop.trf.xlu0 }
 0x239   :  { %v366_v15 = vmul.f32 %v297_v59, %v254_v53 }
 0x23b   :  { %v384_v22 = vsel %vm380_vm2, %v366_v15, 0.0 }
 0x23c   :  { %v255_v54 = vpop.trf.xlu0 }
 0x23d   :  { %v367_v19 = vmul.f32 %v302_v61, %v255_v54 }
 0x23f   :  { %v386_v25 = vsel %vm380_vm2, %v367_v19, 0.0 }
 0x240   :  { %v256_v55 = vpop.trf.xlu0 }
 0x241   :  { %v368_v23 = vmul.f32 %v307_v63, %v256_v55 }
 0x243   :  { %v388_v29 = vsel %vm380_vm2, %v368_v23, 0.0 }
 0x244   :  { %v257_v56 = vpop.trf.xlu0 }
 0x245   :  { %v369_v26 = vmul.f32 %v312_v1, %v257_v56  ;;  %v424_v1 = vlaneseq }
 0x247   :  { %v390_v32 = vsel %vm380_vm2, %v369_v26, 0.0 }
 0x248   :  { %v258_v58 = vpop.trf.xlu0 }
 0x249   :  { %v370_v30 = vmul.f32 %v317_v3, %v258_v58 }
 0x24b   :  { %v392_v35 = vsel %vm380_vm2, %v370_v30, 0.0 }
 0x24c   :  { %v259_v60 = vpop.trf.xlu0 }
 0x24d   :  { %v371_v33 = vmul.f32 %v322_v5, %v259_v60 }
 0x24f   :  { %v394_v39 = vsel %vm380_vm2, %v371_v33, 0.0 }
 0x250   :  { %v260_v62 = vpop.trf.xlu0 }
 0x251   :  { %v372_v36 = vmul.f32 %v327_v7, %v260_v62 }
 0x253   :  { %v396_v42 = vsel %vm380_vm2, %v372_v36, 0.0 }
 0x254   :  { %v261_v0 = vpop.trf.xlu0 }
 0x255   :  { %v373_v40 = vmul.f32 %v332_v9, %v261_v0  ;;  %v422_v9 = vpop.permute.xlu1 %421 }
 0x257   :  { %v398_v45 = vsel %vm380_vm2, %v373_v40, 0.0 }
 0x258   :  { %v262_v2 = vpop.trf.xlu0 }
 0x259   :  { %v374_v43 = vmul.f32 %v337_v11, %v262_v2 }
 0x25b   :  { %v400_v49 = vsel %vm380_vm2, %v374_v43, 0.0 }
 0x25c   :  { %v263_v4 = vpop.trf.xlu0 }
 0x25d   :  { %v375_v46 = vmul.f32 %v342_v17, %v263_v4  ;;  %v425_v4 = vshrl.u32 %v424_v1, 7 }
 0x25f   :  { %v402_v52 = vsel %vm380_vm2, %v375_v46, 0.0  ;;  %v426_v7 = vsub.s32 0, %v425_v4 }
 0x260   :  { %v264_v6 = vpop.trf.xlu0 }
 0x261   :  { %v376_v50 = vmul.f32 %v347_v27, %v264_v6  ;;  %v427_v11 = vrot.slane %v422_v9, %v426_v7 }
 0x263   :  { %v404_v55 = vsel %vm380_vm2, %v376_v50, 0.0 }
 0x264   :  { %v265_v8 = vpop.trf.xlu0 }
 0x265   :  { %v377_v53 = vmul.f32 %v352_v37, %v265_v8 }
 0x267   :  { %v406_v59 = vsel %vm380_vm2, %v377_v53, 0.0 }
 0x268   :  { %v266_v10 = vpop.trf.xlu0 }
 0x269   :  { %v378_v56 = vmul.f32 %v357_v47, %v266_v10 }
 0x26b   :  { %v408_v62 = vsel %vm380_vm2, %v378_v56, 0.0 }
 0x26c   :  { %v267_v12 = vpop.trf.xlu0 }
 0x26d   :  { %v379_v60 = vmul.f32 %v362_v57, %v267_v12 }
 0x26f   :  { %v410_v0 = vsel %vm380_vm2, %v379_v60, 0.0 }
 0x294   :  { %v287_v14 = vpop.permute.xlu0 %286 }
 0x295   :  { %v364_v16 = vmul.f32 %v287_v14, %v252_v51 }
 0x297   :  { %v381_v20 = vsel %vm380_vm2, %v364_v16, 0.0 }
 0x298   :  { %v383_v21 = vadd.f32 %v382_v18, %v381_v20 }
 0x29a   :  { %v385_v24 = vadd.f32 %v384_v22, %v383_v21 }
 0x29c   :  { %v387_v28 = vadd.f32 %v386_v25, %v385_v24 }
 0x29e   :  { %v389_v31 = vadd.f32 %v388_v29, %v387_v28 }
 0x2a0   :  { %v391_v34 = vadd.f32 %v390_v32, %v389_v31 }
 0x2a2   :  { %v393_v38 = vadd.f32 %v392_v35, %v391_v34 }
 0x2a4   :  { %v395_v41 = vadd.f32 %v394_v39, %v393_v38 }
 0x2a6   :  { %v397_v44 = vadd.f32 %v396_v42, %v395_v41 }
 0x2a8   :  { %v399_v48 = vadd.f32 %v398_v45, %v397_v44 }
 0x2aa   :  { %v401_v51 = vadd.f32 %v400_v49, %v399_v48 }
 0x2ac   :  { %v403_v54 = vadd.f32 %v402_v52, %v401_v51 }
 0x2ae   :  { %v405_v58 = vadd.f32 %v404_v55, %v403_v54 }
 0x2b0   :  { %v407_v61 = vadd.f32 %v406_v59, %v405_v58 }
 0x2b2   :  { %v409_v63 = vadd.f32 %v408_v62, %v407_v61 }
 0x2b4   :  { %v411_v2 = vadd.f32 %v410_v0, %v409_v63 }
 0x2b6   :  { %v412_v3 = vrot.slane %v411_v2, 4 }
 0x2b8   :  { %v413_v5 = vadd.f32 %v412_v3, %v411_v2 }
 0x2ba   :  { %v414_v6 = vrot.slane %v413_v5, 2 }
 0x2bc   :  { %v415_v8 = vadd.f32 %v414_v6, %v413_v5 }
 0x2be   :  { %v416_v10 = vrot.slane %v415_v8, 1 }
 0x2c0   :  { %v417_v12 = vadd.f32 %v416_v10, %v415_v8 }
 0x2c2   :  { %v428_v13 = vadd.f32 %v427_v11, %v417_v12 }
 0x2c4   :  { %430 = vst.msk [vmem:[#allocation8] sm:$0x1] %vm429_vm3, %v428_v13 }
 0x2c5   :  { %579 = shalt.err (!%p576_p0)
}
 0x2c6   :  { %440 = dma.vmem_to_hbm [thread:$0]  %s438_s5, 16, %s801_s7, [#allocation5]  }
 0x2c7   :  { %592 = dma.done.wait [#allocation5], 16  }
 0x2c8   :  { %593 = vsyncadd [#allocation5], 4294967280 }
 0x2c9   :  { %444 = vsyncpa [#allocation4], 1 }
 0x2ca   :  { %445 = vsyncpa [#allocation7], 1 }
 0x2cb   :  { %446 = vsyncpa [#allocation5], 1 }

</bundles_post_ra>
